<compile_context>
chip_gen: v6e
topology: v6e:2x2x1
jax: 0.10.0
libtpu: 0.0.40
codegen_flags: <defaults>
</compile_context>

<pallas_src>
import jax
import jax.numpy as jnp
from jax.experimental import pallas as pl
from jax.experimental.pallas import tpu as pltpu

KH = KW = 3  # 3x3 conv


def _matmul_kernel(w_ref, p_ref, o_ref):
    """o(Cout, Mblk) = w(Cout, K) @ p(K, Mblk);  K = 9*Cin, M = N*H*W on lanes."""
    o_ref[...] = jnp.dot(w_ref[...], p_ref[...],
                         preferred_element_type=jnp.float32).astype(o_ref.dtype)


def conv3x3_as_matmul(w2, patches, *, block_m=None):
    """w2: (Cout, 9*Cin), patches: (9*Cin, M=N*H*W) -> (Cout, M)."""
    cout, k = w2.shape
    _, m = patches.shape
    if block_m is None:
        # Whole problem fits comfortably in VMEM at these sizes -> one grid
        # step (per-step overhead would dominate a kernel this tiny).
        # For much larger H/W/Cin (or on v7x: 2 TCs/chip, 64 MiB VMEM) choose a
        # block_m that is a multiple of 128 and gives >= 2 parallel grid steps.
        block_m = m
    assert m % block_m == 0 and (block_m % 128 == 0 or block_m == m)

    return pl.pallas_call(
        _matmul_kernel,
        out_shape=jax.ShapeDtypeStruct((cout, m), patches.dtype),
        grid_spec=pltpu.PrefetchScalarGridSpec(
            num_scalar_prefetch=0,
            grid=(m // block_m,),
            in_specs=[
                pl.BlockSpec((cout, k), lambda i: (0, 0)),      # weight slab (resident)
                pl.BlockSpec((k, block_m), lambda i: (0, i)),   # patch slab
            ],
            out_specs=pl.BlockSpec((cout, block_m), lambda i: (0, i)),  # lane-dense
        ),
        compiler_params=pltpu.CompilerParams(
            dimension_semantics=("parallel",)),
    )(w2, patches)


def scaled_std_weight(w_oihw, gain, eps=1e-5, gamma=1.0):
    """ScaledStdConv2d.get_weight() with use_layernorm=True (timm semantics).

    weight = gain * scale * layer_norm(W, W.shape[1:], eps=eps**2)
    scale  = gamma * fan_in ** -0.5
    """
    cout, cin, kh, kw = w_oihw.shape
    fan_in = cin * kh * kw
    scale = gamma * fan_in ** -0.5
    eps_ln = eps ** 2  # timm squares eps on the use_layernorm path
    mean = jnp.mean(w_oihw, axis=(1, 2, 3), keepdims=True)
    var = jnp.var(w_oihw, axis=(1, 2, 3), keepdims=True)  # biased, like F.layer_norm
    w_std = (w_oihw - mean) / jnp.sqrt(var + eps_ln)
    return gain * (scale * w_std)


def _im2col_nchw(x_nchw):
    """(N, Cin, H, W) -> (9*Cin, N*H*W) patch slab for 3x3 / stride-1 / pad-1.

    K index order is (cin, kh, kw) to match w.reshape(Cout, Cin*9); the pad=1
    halo is folded into the patch build and fused by XLA under jit.
    """
    n, cin, h, w = x_nchw.shape
    xp = jnp.pad(x_nchw, ((0, 0), (0, 0), (1, 1), (1, 1)))
    taps = [xp[:, :, kh:kh + h, kw:kw + w]
            for kh in range(KH) for kw in range(KW)]        # 9 x (N, Cin, H, W)
    p = jnp.stack(taps, axis=2)                             # (N, Cin, 9, H, W)
    p = jnp.transpose(p, (1, 2, 0, 3, 4))                   # (Cin, 9, N, H, W)
    return p.reshape(cin * KH * KW, n * h * w)


@jax.jit
def lastconv_forward(x_nchw, w_oihw, gain):
    """Full lastconv forward. Input/output are NCHW, like PyTorch."""
    n, cin, h, w = x_nchw.shape
    cout = w_oihw.shape[0]
    oup = cout // 4

    # Weight standardization + flatten to a lane-friendly 2-D slab (Cout, 9*Cin).
    w_std = scaled_std_weight(w_oihw, gain)                 # (Cout, Cin, 3, 3)
    w2 = w_std.reshape(cout, cin * KH * KW)                 # (Cout, 9*Cin)

    # im2col: spatial (N*H*W) on the lane axis.
    patches = _im2col_nchw(x_nchw)                          # (9*Cin, N*H*W)

    # One MXU matmul in Pallas (f32 in / f32 accumulate; cast to bf16 here for
    # higher MXU throughput on v6e/v7x if reduced precision is acceptable).
    y = conv3x3_as_matmul(w2, patches)                      # (Cout, N*H*W)

    # PixelShuffle(2) + NCHW output: pure layout plumbing, fused by XLA.
    # y[o*4 + i*2 + j, n*H*W + h*W + w] -> out[n, o, 2h+i, 2w+j]
    y = y.reshape(oup, 2, 2, n, h, w)
    y = jnp.transpose(y, (3, 0, 4, 1, 5, 2))                # (N, oup, H, 2, W, 2)
    return y.reshape(n, oup, 2 * h, 2 * w)


if __name__ == "__main__":
    # Module config: lastconv(inp=4, oup=8), input (N=2, C=4, H=16, W=16)
    inp, oup = 4, 8
    N, H, W = 2, 16, 16
    cout = oup * 4

    key = jax.random.PRNGKey(0)
    kx, kw = jax.random.split(key)
    x = jax.random.normal(kx, (N, inp, H, W), dtype=jnp.float32)
    # conv weight OIHW (like nn.Conv2d), deterministic init; gain init = 1.0
    w = jax.random.normal(kw, (cout, inp, KH, KW), dtype=jnp.float32) * 0.1
    gain = jnp.ones((cout, 1, 1, 1), dtype=jnp.float32)

    out = lastconv_forward(x, w, gain)
    out = jax.block_until_ready(out)
    assert out.shape == (N, oup, 2 * H, 2 * W), out.shape
    assert bool(jnp.all(jnp.isfinite(out)))
    print("KERNEL_OK")
</pallas_src>

<mosaic_0001>
module attributes {stable_mosaic.version = 11 : i64} {
  func.func @_matmul_kernel(%arg0: i32, %arg1: memref<32x36xf32, #tpu.memory_space<vmem>>, %arg2: memref<36x512xf32, #tpu.memory_space<vmem>>, %arg3: memref<32x512xf32, #tpu.memory_space<vmem>>) attributes {dimension_semantics = [#tpu.dimension_semantics<parallel>], iteration_bounds = array<i64: 1>, scalar_prefetch = 0 : i64, scratch_operands = 0 : i64, tpu.core_type = #tpu.core_type<tc>, window_params = [{pipeline_mode = #tpu.pipeline_mode<synchronous>, transform_indices = @transform_0, window_bounds = array<i64: 32, 36>}, {transform_indices = @transform_1, window_bounds = array<i64: 36, 512>}, {transform_indices = @transform_2, window_bounds = array<i64: 32, 512>}]} {
    %c0 = arith.constant 0 : index
    %c0_0 = arith.constant 0 : index
    %0 = vector.load %arg1[%c0, %c0_0] : memref<32x36xf32, #tpu.memory_space<vmem>>, vector<32x36xf32>
    %c0_1 = arith.constant 0 : index
    %c0_2 = arith.constant 0 : index
    %1 = vector.load %arg2[%c0_1, %c0_2] : memref<36x512xf32, #tpu.memory_space<vmem>>, vector<36x512xf32>
    %cst = arith.constant dense<0.000000e+00> : vector<32x512xf32>
    %2 = tpu.matmul %0, %1, %cst {dimension_numbers = #tpu.dot_dimension_numbers<[1], [0], [0], [1], [0, 0, 1, 1], [], []>} : vector<32x36xf32>, vector<36x512xf32>, vector<32x512xf32> -> vector<32x512xf32>
    %c0_3 = arith.constant 0 : index
    %c0_4 = arith.constant 0 : index
    %3 = vector.load %arg3[%c0_3, %c0_4] : memref<32x512xf32, #tpu.memory_space<vmem>>, vector<32x512xf32>
    tpu.vector_store %arg3[%c0_3, %c0_4], %2 {strides = array<i32>} : memref<32x512xf32, #tpu.memory_space<vmem>>, vector<32x512xf32>,
    return
  }
  func.func @transform_0(%arg0: i32) -> (i32, i32) {
    %c0_i32 = arith.constant 0 : i32
    %c0_i32_0 = arith.constant 0 : i32
    %c0_i32_1 = arith.constant 0 : i32
    return %c0_i32, %c0_i32_0 : i32, i32
  }
  func.func @transform_1(%arg0: i32) -> (i32, i32) {
    %c0_i32 = arith.constant 0 : i32
    %c0_i32_0 = arith.constant 0 : i32
    return %c0_i32, %arg0 : i32, i32
  }
  func.func @transform_2(%arg0: i32) -> (i32, i32) {
    %c0_i32 = arith.constant 0 : i32
    %c0_i32_0 = arith.constant 0 : i32
    return %c0_i32, %arg0 : i32, i32
  }
}

</mosaic_0001>

<bundles_post_ra>
// kernel: lastconv_forward.1
= control target key start
LH: loop header
LB: loop body
LE: loop exit
PB: predicated region body
PF: predicated region fallthrough
CT: control target
= control target key end

     0   :  { %vm48_vm0 = vcmask 1043456   ;;  %v272_v3 = vmov 0.0   ;;  %vm35_vm1 = vcmask 293888   ;;  %s416_s1 = inlined_call_operand.vmem [shape: f32[36,512], index: 1, kind: input, shape index: {}]   ;;  %s417_s0 = inlined_call_operand.vmem [shape: f32[32,36], index: 0, kind: input, shape index: {}]   ;;  %s418_s2 = inlined_call_operand.vmem [shape: f32[32,512], index: 2, kind: output, shape index: {}]  }
   0x1   :  { %v32_v0 = vld [vmem:[%s416_s1 + $0x88] sm:$0xf]  ;;  %v34_v1 = vld [vmem:[%s416_s1 + $0x98] sm:$0xf]  ;;  %v31_v2 = vld [vmem:[%s416_s1 + $0x80] sm:$0xf]  ;;  %125 = vmatprep.mubr.f32.mxu0 %v272_v3  ;;  %214 = vmatprep.mubr.f32.mxu1 %v272_v3 }
   0x2   :  { %259 = vmatprep.subr.msk.mxu0 %vm48_vm0, %v32_v0  ;;  %265 = vmatprep.subr.msk.mxu1 %vm48_vm0, %v34_v1  ;;  %v33_v4 = vld [vmem:[%s416_s1 + $0x90] sm:$0xf]  ;;  %v28_v5 = vld [vmem:[%s416_s1 + $0x68] sm:$0xff]  ;;  %v30_v6 = vld [vmem:[%s416_s1 + $0x78] sm:$0xff] }
   0x3   :  { %260 = vmatpush1.msk.msra.mxu0 %vm48_vm0, %v31_v2  ;;  %266 = vmatpush1.msk.msra.mxu1 %vm48_vm0, %v33_v4  ;;  %v27_v7 = vld [vmem:[%s416_s1 + $0x60] sm:$0xff]  ;;  %v29_v8 = vld [vmem:[%s416_s1 + $0x70] sm:$0xff]  ;;  %v24_v9 = vld [vmem:[%s416_s1 + $0x48] sm:$0xff] }
   0x4   :  { %85 = vmatprep.subr.mxu0 %v28_v5  ;;  %174 = vmatprep.subr.mxu1 %v30_v6  ;;  %v26_v10 = vld [vmem:[%s416_s1 + $0x58] sm:$0xff]  ;;  %v23_v11 = vld [vmem:[%s416_s1 + $0x40] sm:$0xff]  ;;  %v25_v12 = vld [vmem:[%s416_s1 + $0x50] sm:$0xff] }
   0x5   :  { %86 = vmatpush1.msra.mxu0 %v27_v7  ;;  %175 = vmatpush1.msra.mxu1 %v29_v8  ;;  %v20_v13 = vld [vmem:[%s416_s1 + $0x28] sm:$0xff]  ;;  %v22_v14 = vld [vmem:[%s416_s1 + $0x38] sm:$0xff]  ;;  %v19_v15 = vld [vmem:[%s416_s1 + $0x20] sm:$0xff] }
   0x6   :  { %87 = vmatprep.subr.mxu0 %v24_v9  ;;  %176 = vmatprep.subr.mxu1 %v26_v10  ;;  %v21_v16 = vld [vmem:[%s416_s1 + $0x30] sm:$0xff]  ;;  %v16_v17 = vld [vmem:[%s416_s1 + $0x8] sm:$0xff]  ;;  %v18_v18 = vld [vmem:[%s416_s1 + $0x18] sm:$0xff] }
   0x7   :  { %88 = vmatpush1.msra.mxu0 %v23_v11  ;;  %177 = vmatpush1.msra.mxu1 %v25_v12  ;;  %v15_v19 = vld [vmem:[%s416_s1] sm:$0xff]  ;;  %v17_v20 = vld [vmem:[%s416_s1 + $0x10] sm:$0xff]  ;;  %v12_v22 = vld [vmem:[%s417_s0 + $0x8] sm:$0xff] }
   0x8   :  { %89 = vmatprep.subr.mxu0 %v20_v13  ;;  %178 = vmatprep.subr.mxu1 %v22_v14  ;;  %v11_v21 = vld [vmem:[%s417_s0] sm:$0xff]  ;;  %v13_v23 = vld [vmem:[%s417_s0 + $0x10] sm:$0xff]  ;;  %v14_v24 = vld [vmem:[%s417_s0 + $0x18] sm:$0xff] }
   0x9   :  { %90 = vmatpush1.msra.mxu0 %v19_v15  ;;  %179 = vmatpush1.msra.mxu1 %v21_v16 }
   0xa   :  { %91 = vmatprep.subr.mxu0 %v16_v17  ;;  %180 = vmatprep.subr.mxu1 %v18_v18 }
   0xb   :  { %92 = vmatpush1.msra.mxu0 %v15_v19  ;;  %181 = vmatpush1.msra.mxu1 %v17_v20 }
   0xc   :  { %261 = vmatmul.mubr.msk.f32.vlgmr.msra.gmra.mxu0 %vm35_vm1, %v11_v21  ;;  %267 = vmatmul.mubr.msk.f32.vlgmr.msra.gmra.mxu1 %vm35_vm1, %v11_v21 }
   0xd   :  { %131 = vmatprep.mubr.f32.mxu0 %v272_v3  ;;  %220 = vmatprep.mubr.f32.mxu1 %v272_v3 }
  0x10   :  { %262 = vmatmul.mubr.msk.f32.gmra.mxu0 %vm35_vm1, %v12_v22  ;;  %268 = vmatmul.mubr.msk.f32.gmra.mxu1 %vm35_vm1, %v12_v22 }
  0x11   :  { %137 = vmatprep.mubr.f32.mxu0 %v272_v3  ;;  %226 = vmatprep.mubr.f32.mxu1 %v272_v3 }
  0x14   :  { %263 = vmatmul.mubr.msk.f32.gmra.mxu0 %vm35_vm1, %v13_v23  ;;  %269 = vmatmul.mubr.msk.f32.gmra.mxu1 %vm35_vm1, %v13_v23 }
  0x15   :  { %143 = vmatprep.mubr.f32.mxu0 %v272_v3  ;;  %232 = vmatprep.mubr.f32.mxu1 %v272_v3 }
  0x18   :  { %264 = vmatmul.mubr.msk.f32.gmra.mxu0 %vm35_vm1, %v14_v24  ;;  %270 = vmatmul.mubr.msk.f32.gmra.mxu1 %vm35_vm1, %v14_v24 }
  0xcc   :  { %v127_v25 = vpop.f32.mrf.mxu0  ;;  %v216_v26 = vpop.f32.mrf.mxu1 }
  0xcd   :  { %239 = vst [vmem:[%s418_s2] sm:$0xff] %v127_v25  ;;  %241 = vst [vmem:[%s418_s2 + $0x10] sm:$0xff] %v216_v26 }
  0xce   :  { %v129_v27 = vpop.f32.mrf.mxu0  ;;  %v218_v28 = vpop.f32.mrf.mxu1 }
  0xcf   :  { %240 = vst [vmem:[%s418_s2 + $0x8] sm:$0xff] %v129_v27  ;;  %242 = vst [vmem:[%s418_s2 + $0x18] sm:$0xff] %v218_v28 }
  0xd0   :  { %v133_v29 = vpop.f32.mrf.mxu0  ;;  %v222_v30 = vpop.f32.mrf.mxu1 }
  0xd1   :  { %243 = vst [vmem:[%s418_s2 + $0x20] sm:$0xff] %v133_v29  ;;  %245 = vst [vmem:[%s418_s2 + $0x30] sm:$0xff] %v222_v30 }
  0xd2   :  { %v135_v31 = vpop.f32.mrf.mxu0  ;;  %v224_v32 = vpop.f32.mrf.mxu1 }
  0xd3   :  { %244 = vst [vmem:[%s418_s2 + $0x28] sm:$0xff] %v135_v31  ;;  %246 = vst [vmem:[%s418_s2 + $0x38] sm:$0xff] %v224_v32 }
  0xd4   :  { %v139_v33 = vpop.f32.mrf.mxu0  ;;  %v228_v34 = vpop.f32.mrf.mxu1 }
  0xd5   :  { %247 = vst [vmem:[%s418_s2 + $0x40] sm:$0xff] %v139_v33  ;;  %249 = vst [vmem:[%s418_s2 + $0x50] sm:$0xff] %v228_v34 }
  0xd6   :  { %v141_v35 = vpop.f32.mrf.mxu0  ;;  %v230_v36 = vpop.f32.mrf.mxu1 }
  0xd7   :  { %248 = vst [vmem:[%s418_s2 + $0x48] sm:$0xff] %v141_v35  ;;  %250 = vst [vmem:[%s418_s2 + $0x58] sm:$0xff] %v230_v36 }
  0xd8   :  { %v145_v37 = vpop.f32.mrf.mxu0  ;;  %v234_v38 = vpop.f32.mrf.mxu1 }
  0xd9   :  { %251 = vst [vmem:[%s418_s2 + $0x60] sm:$0xff] %v145_v37  ;;  %253 = vst [vmem:[%s418_s2 + $0x70] sm:$0xff] %v234_v38 }
  0xda   :  { %v147_v39 = vpop.f32.mrf.mxu0  ;;  %v236_v40 = vpop.f32.mrf.mxu1 }
  0xdb   :  { %252 = vst [vmem:[%s418_s2 + $0x68] sm:$0xff] %v147_v39  ;;  %254 = vst [vmem:[%s418_s2 + $0x78] sm:$0xff] %v236_v40 }

</bundles_post_ra>
